<compile_context>
chip_gen: v7x
topology: tpu7x:2x2x1
jax: 0.10.0
libtpu: 0.0.40
codegen_flags: <defaults>
</compile_context>

<pallas_src>
import functools

import jax
import jax.numpy as jnp
from jax import lax
from jax.experimental import pallas as pl
from jax.experimental.pallas import tpu as pltpu

BN_EPS = 1e-5
LANES = 128
SUBLANES = 8


# ------------------------------- helpers ---------------------------------- #
def _round_up(x, m):
    return ((x + m - 1) // m) * m


def _pick_tile_rows(m, target):
    """Row tile: a multiple of 8, <= target (M is zero-padded to a multiple of it)."""
    tm = min(_round_up(target, SUBLANES), _round_up(m, SUBLANES))
    return max(tm, SUBLANES)


def _vmem_limit(resident_bytes):
    """Scoped-VMEM budget: resident set + headroom, bounded for v7x (64 MiB physical / TC)."""
    return int(min(max(2 * resident_bytes + (8 << 20), 32 << 20), 48 << 20))


def _im2col(x_nhwc):
    """(N,H,W,C) -> (N*H*W, 9*C) bf16 patches for a 3x3 conv, padding=1 (layout only)."""
    N, H, W, C = x_nhwc.shape
    xp = jnp.pad(x_nhwc, ((0, 0), (1, 1), (1, 1), (0, 0)))
    cols = [xp[:, kh:kh + H, kw:kw + W, :] for kh in range(3) for kw in range(3)]
    patches = jnp.stack(cols, axis=3)          # (N, H, W, 9, C), index order (kh*3+kw, c)
    return patches.reshape(N * H * W, 9 * C).astype(jnp.bfloat16)


def _pool_and_im2col(x_nhwc):
    """Fused 2x2/stride-2 max-pool + im2col.  The pool is an elementwise max of four lazy
    strided slices, fused by XLA into the patch-building pass: neither the four taps nor the
    pooled tensor are materialized in HBM (only the bf16 patch matrix is written)."""
    N, H, W, C = x_nhwc.shape
    He, We = (H // 2) * 2, (W // 2) * 2        # floor-crop odd trailing rows/cols (PyTorch)
    x = x_nhwc[:, :He, :We, :]
    pooled = jnp.maximum(
        jnp.maximum(x[:, 0::2, 0::2, :], x[:, 0::2, 1::2, :]),
        jnp.maximum(x[:, 1::2, 0::2, :], x[:, 1::2, 1::2, :]))
    return _im2col(pooled)


def _out_channels_padded(co):
    """Lane-pad Co only when it is large enough that padding does not dominate output bytes."""
    if co % LANES == 0:
        return co
    return _round_up(co, LANES) if co >= 64 else co


def _prep_params(w, gamma, beta):
    """Conv weight (Co,Ci,3,3) -> bf16 (9*Ci, Co_out) matmul weight; pad gamma/beta to Co_out."""
    Co, Ci, _, _ = w.shape
    co_out = _out_channels_padded(Co)
    wm = jnp.transpose(w, (2, 3, 1, 0)).reshape(9 * Ci, Co)
    wm = jnp.pad(wm, ((0, 0), (0, co_out - Co))).astype(jnp.bfloat16)
    g = jnp.pad(gamma.astype(jnp.float32), (0, co_out - Co)).reshape(1, co_out)
    b = jnp.pad(beta.astype(jnp.float32), (0, co_out - Co)).reshape(1, co_out)
    return wm, g, b


# ----------------------------- Pallas kernels ------------------------------ #
def _conv_stats_kernel(p_ref, w_ref, z_ref, sum_ref, sqs_ref):
    """3x3 conv as a bf16 MXU matmul (f32 accumulation).  Writes z once (bf16) and accumulates
    per-channel batch sum / sum-of-squares into resident f32 output blocks (constant index_map,
    single HBM writeback at grid end).  Conv bias is omitted: training-mode BN subtracts the
    batch mean right after the conv, so the bias cancels exactly."""
    i = pl.program_id(0)
    z = jnp.dot(p_ref[...], w_ref[...], preferred_element_type=jnp.float32)

    @pl.when(i == 0)
    def _init_stats():
        sum_ref[...] = jnp.zeros_like(sum_ref)
        sqs_ref[...] = jnp.zeros_like(sqs_ref)

    sum_ref[...] += jnp.sum(z, axis=0, keepdims=True)
    sqs_ref[...] += jnp.sum(z * z, axis=0, keepdims=True)
    z_ref[...] = z.astype(z_ref.dtype)


def _bn_relu_kernel(z_ref, scale_ref, shift_ref, o_ref):
    """Apply the folded per-channel BN scale/shift + ReLU (VPU-only, no matmul recompute)."""
    z = z_ref[...].astype(jnp.float32)
    o_ref[...] = jnp.maximum(z * scale_ref[...] + shift_ref[...], 0.0).astype(o_ref.dtype)


# ----------------------------- kernel wrappers ----------------------------- #
def _conv_stats(patches, wmat, *, tm):
    """patches (M_pad, K) bf16 @ wmat (K, Co_out) bf16 -> z bf16 + per-channel sum / sumsq."""
    M, K = patches.shape
    co = wmat.shape[1]
    grid = (M // tm,)

    resident = K * co * 2 + 2 * tm * K * 2 + 2 * tm * co * 2 + 4 * co * 4
    flops = 2 * M * K * co
    bytes_accessed = M * K * 2 + K * co * 2 + M * co * 2 + 2 * co * 4

    return pl.pallas_call(
        _conv_stats_kernel,
        out_shape=(jax.ShapeDtypeStruct((M, co), jnp.bfloat16),   # z (written once)
                   jax.ShapeDtypeStruct((1, co), jnp.float32),    # per-channel sum
                   jax.ShapeDtypeStruct((1, co), jnp.float32)),   # per-channel sum of squares
        grid=grid,
        in_specs=[pl.BlockSpec((tm, K), lambda i: (i, 0)),        # im2col patch rows (bf16)
                  pl.BlockSpec((K, co), lambda i: (0, 0))],       # weight matrix (bf16)
        out_specs=(pl.BlockSpec((tm, co), lambda i: (i, 0)),
                   pl.BlockSpec((1, co), lambda i: (0, 0)),       # resident accumulator
                   pl.BlockSpec((1, co), lambda i: (0, 0))),      # resident accumulator
        compiler_params=pltpu.CompilerParams(
            # Stat accumulators are carried across row tiles -> axis must run in order.
            dimension_semantics=("arbitrary",),
            vmem_limit_bytes=_vmem_limit(resident)),
        cost_estimate=pl.CostEstimate(flops=flops, transcendentals=0,
                                      bytes_accessed=bytes_accessed),
    )(patches, wmat)


def _bn_relu_apply(z, scale, shift, *, tm, out_dtype):
    """Elementwise BN(scale,shift) + ReLU over the stored z; m axis is megacore-parallel."""
    M, co = z.shape
    grid = (M // tm,)
    out_isz = jnp.dtype(out_dtype).itemsize
    resident = 2 * tm * co * 2 + 2 * tm * co * out_isz + 2 * co * 4
    bytes_accessed = M * co * 2 + 2 * co * 4 + M * co * out_isz

    return pl.pallas_call(
        _bn_relu_kernel,
        out_shape=jax.ShapeDtypeStruct((M, co), out_dtype),
        grid=grid,
        in_specs=[pl.BlockSpec((tm, co), lambda i: (i, 0)),
                  pl.BlockSpec((1, co), lambda i: (0, 0)),
                  pl.BlockSpec((1, co), lambda i: (0, 0))],
        out_specs=pl.BlockSpec((tm, co), lambda i: (i, 0)),
        compiler_params=pltpu.CompilerParams(
            dimension_semantics=("parallel",),            # shardable across v7x's 2 TCs
            vmem_limit_bytes=_vmem_limit(resident)),
        cost_estimate=pl.CostEstimate(flops=3 * M * co, transcendentals=0,
                                      bytes_accessed=bytes_accessed),
    )(z, scale, shift)


def _conv_bn_relu(patches, w, gamma, beta, *, tile_rows_target, out_dtype):
    """Full conv3x3 + BatchNorm(batch stats) + ReLU stage built from the two kernels above."""
    wmat, g, b = _prep_params(w, gamma, beta)
    Co = w.shape[0]
    M, K = patches.shape

    tm = _pick_tile_rows(M, tile_rows_target)
    M_pad = _round_up(M, tm)
    if M_pad != M:
        # Zero rows contribute nothing to sum / sumsq (inv_rows uses the true M) and their
        # outputs are sliced off below, so padding is exact.
        patches = jnp.pad(patches, ((0, M_pad - M), (0, 0)))

    z, s, sq = _conv_stats(patches, wmat, tm=tm)

    # Tiny per-channel finalize in plain JAX (O(Co) work): batch mean/var -> folded scale/shift.
    inv_rows = 1.0 / float(M)
    mu = s * inv_rows
    var = jnp.maximum(sq * inv_rows - mu * mu, 0.0)       # clamp: guards rsqrt round-off -> NaN
    scale = g * lax.rsqrt(var + BN_EPS)
    shift = b - mu * scale

    y = _bn_relu_apply(z, scale, shift, tm=tm, out_dtype=out_dtype)
    return y[:M, :Co]                                      # drop row padding / lane padding


# ------------------------------ forward pass ------------------------------- #
def down_forward(x_nchw, params, *, tile_rows_target=256):
    """Forward pass of Down: MaxPool2d(2) -> double_conv.  I/O is NCHW (PyTorch layout)."""
    x = jnp.transpose(x_nchw, (0, 2, 3, 1)).astype(jnp.float32)   # NHWC
    N, H, W, _ = x.shape
    Hp, Wp = H // 2, W // 2
    Cmid = params["w1"].shape[0]
    Cout = params["w2"].shape[0]

    # Stage 1: pool (fused into the patch build) -> conv1 -> BN1 -> ReLU, bf16 output.
    patches1 = _pool_and_im2col(x)                                 # (N*Hp*Wp, 9*Cin) bf16
    y1 = _conv_bn_relu(patches1, params["w1"], params["g1"], params["beta1"],
                       tile_rows_target=tile_rows_target, out_dtype=jnp.bfloat16)
    y1 = y1.reshape(N, Hp, Wp, Cmid)

    # Stage 2: conv2 -> BN2 -> ReLU, f32 output (module output dtype).
    patches2 = _im2col(y1)                                         # already bf16
    y2 = _conv_bn_relu(patches2, params["w2"], params["g2"], params["beta2"],
                       tile_rows_target=tile_rows_target, out_dtype=jnp.float32)
    y2 = y2.reshape(N, Hp, Wp, Cout)

    return jnp.transpose(y2, (0, 3, 1, 2))                         # back to NCHW


# ---------------------------- pure-JAX reference --------------------------- #
def _ref_forward(x_nchw, params, operand_dtype=jnp.float32):
    """PyTorch-semantics reference.  operand_dtype=bfloat16 mirrors the kernel's MXU-operand
    quantization for a tighter correctness check (the kernel additionally stores z in bf16)."""
    x = jnp.transpose(x_nchw, (0, 2, 3, 1)).astype(jnp.float32)
    taps = [x[:, i::2, j::2, :] for i in (0, 1) for j in (0, 1)]
    pooled = jnp.maximum(jnp.maximum(taps[0], taps[1]), jnp.maximum(taps[2], taps[3]))

    def conv_bn_relu(h, w, b, g, beta):
        hq = h.astype(operand_dtype).astype(jnp.float32)
        wq = w.astype(operand_dtype).astype(jnp.float32)
        w_hwio = jnp.transpose(wq, (2, 3, 1, 0))
        z = lax.conv_general_dilated(
            hq, w_hwio, window_strides=(1, 1), padding="SAME",
            dimension_numbers=("NHWC", "HWIO", "NHWC")) + b        # bias kept (cancelled by BN)
        mu = jnp.mean(z, axis=(0, 1, 2), keepdims=True)
        var = jnp.mean(jnp.square(z - mu), axis=(0, 1, 2), keepdims=True)
        return jnp.maximum((z - mu) * lax.rsqrt(var + BN_EPS) * g + beta, 0.0)

    h1 = conv_bn_relu(pooled, params["w1"], params["b1"], params["g1"], params["beta1"])
    h2 = conv_bn_relu(h1, params["w2"], params["b2"], params["g2"], params["beta2"])
    return jnp.transpose(h2, (0, 3, 1, 2))


# ----------------------------------- main ---------------------------------- #
if __name__ == "__main__":
    # Down(in_channels=4, out_channels=8); input NCHW (2, 4, 16, 16).
    N, Cin, H, W = 2, 4, 16, 16
    Cmid = Cout = 8

    key = jax.random.PRNGKey(0)
    kx, k1, k2, k3, k4 = jax.random.split(key, 5)
    x = jax.random.normal(kx, (N, Cin, H, W), dtype=jnp.float32)

    params = {
        "w1": 0.1 * jax.random.normal(k1, (Cmid, Cin, 3, 3), dtype=jnp.float32),
        "b1": 0.1 * jax.random.normal(k2, (Cmid,), dtype=jnp.float32),  # cancelled by BN
        "g1": jnp.ones((Cmid,), jnp.float32),                            # BatchNorm2d defaults
        "beta1": jnp.zeros((Cmid,), jnp.float32),
        "w2": 0.1 * jax.random.normal(k3, (Cout, Cmid, 3, 3), dtype=jnp.float32),
        "b2": 0.1 * jax.random.normal(k4, (Cout,), dtype=jnp.float32),  # cancelled by BN
        "g2": jnp.ones((Cout,), jnp.float32),
        "beta2": jnp.zeros((Cout,), jnp.float32),
    }

    # Small row-tile target so the toy shape still exercises a multi-tile grid (pipelined DMA +
    # cross-tile stats accumulation).  Use ~512 (v5e/v6e) / ~256 (v7x) for production shapes.
    fwd = jax.jit(functools.partial(down_forward, tile_rows_target=32))
    out = jax.block_until_ready(fwd(x, params))
    assert out.shape == (N, Cout, H // 2, W // 2), out.shape

    # Check vs. a numerics-matched reference (same bf16 MXU-operand quantization; the kernel
    # additionally stores z / stage-1 activations in bf16, hence the tolerance).
    ref_bf16 = jax.block_until_ready(_ref_forward(x, params, operand_dtype=jnp.bfloat16))
    assert jnp.allclose(out, ref_bf16, rtol=5e-2, atol=5e-2), \
        float(jnp.max(jnp.abs(out - ref_bf16)))

    # Looser sanity check vs. the exact f32 PyTorch-semantics reference.
    ref_f32 = jax.block_until_ready(_ref_forward(x, params, operand_dtype=jnp.float32))
    assert jnp.allclose(out, ref_f32, rtol=1e-1, atol=1e-1), \
        float(jnp.max(jnp.abs(out - ref_f32)))

    print("KERNEL_OK")
</pallas_src>

<mosaic_0001>
module attributes {stable_mosaic.version = 11 : i64} {
  func.func @_conv_stats_kernel(%arg0: i32, %arg1: memref<32x36xbf16, #tpu.memory_space<vmem>>, %arg2: memref<36x8xbf16, #tpu.memory_space<vmem>>, %arg3: memref<32x8xbf16, #tpu.memory_space<vmem>>, %arg4: memref<1x8xf32, #tpu.memory_space<vmem>>, %arg5: memref<1x8xf32, #tpu.memory_space<vmem>>) attributes {dimension_semantics = [#tpu.dimension_semantics<arbitrary>], iteration_bounds = array<i64: 4>, scalar_prefetch = 0 : i64, scratch_operands = 0 : i64, tpu.core_type = #tpu.core_type<tc>, window_params = [{transform_indices = @transform_0, window_bounds = array<i64: 32, 36>}, {pipeline_mode = #tpu.pipeline_mode<synchronous>, transform_indices = @transform_1, window_bounds = array<i64: 36, 8>}, {transform_indices = @transform_2, window_bounds = array<i64: 32, 8>}, {pipeline_mode = #tpu.pipeline_mode<synchronous>, transform_indices = @transform_3, window_bounds = array<i64: 1, 8>}, {pipeline_mode = #tpu.pipeline_mode<synchronous>, transform_indices = @transform_4, window_bounds = array<i64: 1, 8>}]} {
    %c0 = arith.constant 0 : index
    %c0_0 = arith.constant 0 : index
    %0 = vector.load %arg1[%c0, %c0_0] : memref<32x36xbf16, #tpu.memory_space<vmem>>, vector<32x36xbf16>
    %c0_1 = arith.constant 0 : index
    %c0_2 = arith.constant 0 : index
    %1 = vector.load %arg2[%c0_1, %c0_2] : memref<36x8xbf16, #tpu.memory_space<vmem>>, vector<36x8xbf16>
    %cst = arith.constant dense<0.000000e+00> : vector<32x8xf32>
    %2 = tpu.matmul %0, %1, %cst {dimension_numbers = #tpu.dot_dimension_numbers<[1], [0], [0], [1], [0, 0, 1, 1], [], []>} : vector<32x36xbf16>, vector<36x8xbf16>, vector<32x8xf32> -> vector<32x8xf32>
    %c0_i32 = arith.constant 0 : i32
    %3 = arith.cmpi eq, %arg0, %c0_i32 : i32
    %4 = arith.extui %3 : i1 to i32
    %c0_i32_3 = arith.constant 0 : i32
    %5 = arith.cmpi ne, %4, %c0_i32_3 : i32
    scf.if %5 {
      %cst_16 = arith.constant 0.000000e+00 : f32
      %19 = vector.broadcast %cst_16 : f32 to vector<1x8xf32>
      %c0_17 = arith.constant 0 : index
      %c0_18 = arith.constant 0 : index
      %20 = vector.load %arg4[%c0_17, %c0_18] : memref<1x8xf32, #tpu.memory_space<vmem>>, vector<1x8xf32>
      tpu.vector_store %arg4[%c0_17, %c0_18], %19 {strides = array<i32>} : memref<1x8xf32, #tpu.memory_space<vmem>>, vector<1x8xf32>,
      %cst_19 = arith.constant 0.000000e+00 : f32
      %21 = vector.broadcast %cst_19 : f32 to vector<1x8xf32>
      %c0_20 = arith.constant 0 : index
      %c0_21 = arith.constant 0 : index
      %22 = vector.load %arg5[%c0_20, %c0_21] : memref<1x8xf32, #tpu.memory_space<vmem>>, vector<1x8xf32>
      tpu.vector_store %arg5[%c0_20, %c0_21], %21 {strides = array<i32>} : memref<1x8xf32, #tpu.memory_space<vmem>>, vector<1x8xf32>,
    } else {
    }
    %c0_4 = arith.constant 0 : index
    %c0_5 = arith.constant 0 : index
    %6 = vector.load %arg4[%c0_4, %c0_5] : memref<1x8xf32, #tpu.memory_space<vmem>>, vector<1x8xf32>
    %cst_6 = arith.constant dense<0.000000e+00> : vector<8xf32>
    %7 = vector.multi_reduction <add>, %2, %cst_6 [0] : vector<32x8xf32> to vector<8xf32>
    %8 = vector.shape_cast %7 : vector<8xf32> to vector<1x8xf32>
    %9 = arith.addf %6, %8 : vector<1x8xf32>
    %c0_7 = arith.constant 0 : index
    %c0_8 = arith.constant 0 : index
    %10 = vector.load %arg4[%c0_7, %c0_8] : memref<1x8xf32, #tpu.memory_space<vmem>>, vector<1x8xf32>
    tpu.vector_store %arg4[%c0_7, %c0_8], %9 {strides = array<i32>} : memref<1x8xf32, #tpu.memory_space<vmem>>, vector<1x8xf32>,
    %c0_9 = arith.constant 0 : index
    %c0_10 = arith.constant 0 : index
    %11 = vector.load %arg5[%c0_9, %c0_10] : memref<1x8xf32, #tpu.memory_space<vmem>>, vector<1x8xf32>
    %12 = arith.mulf %2, %2 : vector<32x8xf32>
    %cst_11 = arith.constant dense<0.000000e+00> : vector<8xf32>
    %13 = vector.multi_reduction <add>, %12, %cst_11 [0] : vector<32x8xf32> to vector<8xf32>
    %14 = vector.shape_cast %13 : vector<8xf32> to vector<1x8xf32>
    %15 = arith.addf %11, %14 : vector<1x8xf32>
    %c0_12 = arith.constant 0 : index
    %c0_13 = arith.constant 0 : index
    %16 = vector.load %arg5[%c0_12, %c0_13] : memref<1x8xf32, #tpu.memory_space<vmem>>, vector<1x8xf32>
    tpu.vector_store %arg5[%c0_12, %c0_13], %15 {strides = array<i32>} : memref<1x8xf32, #tpu.memory_space<vmem>>, vector<1x8xf32>,
    %17 = arith.truncf %2 : vector<32x8xf32> to vector<32x8xbf16>
    %c0_14 = arith.constant 0 : index
    %c0_15 = arith.constant 0 : index
    %18 = vector.load %arg3[%c0_14, %c0_15] : memref<32x8xbf16, #tpu.memory_space<vmem>>, vector<32x8xbf16>
    tpu.vector_store %arg3[%c0_14, %c0_15], %17 {strides = array<i32>} : memref<32x8xbf16, #tpu.memory_space<vmem>>, vector<32x8xbf16>,
    return
  }
  func.func @transform_0(%arg0: i32) -> (i32, i32) {
    %c0_i32 = arith.constant 0 : i32
    %c0_i32_0 = arith.constant 0 : i32
    return %arg0, %c0_i32 : i32, i32
  }
  func.func @transform_1(%arg0: i32) -> (i32, i32) {
    %c0_i32 = arith.constant 0 : i32
    %c0_i32_0 = arith.constant 0 : i32
    %c0_i32_1 = arith.constant 0 : i32
    return %c0_i32, %c0_i32_0 : i32, i32
  }
  func.func @transform_2(%arg0: i32) -> (i32, i32) {
    %c0_i32 = arith.constant 0 : i32
    %c0_i32_0 = arith.constant 0 : i32
    return %arg0, %c0_i32 : i32, i32
  }
  func.func @transform_3(%arg0: i32) -> (i32, i32) {
    %c0_i32 = arith.constant 0 : i32
    %c0_i32_0 = arith.constant 0 : i32
    %c0_i32_1 = arith.constant 0 : i32
    return %c0_i32, %c0_i32_0 : i32, i32
  }
  func.func @transform_4(%arg0: i32) -> (i32, i32) {
    %c0_i32 = arith.constant 0 : i32
    %c0_i32_0 = arith.constant 0 : i32
    %c0_i32_1 = arith.constant 0 : i32
    return %c0_i32, %c0_i32_0 : i32, i32
  }
}

module attributes {stable_mosaic.version = 11 : i64} {
  func.func @_bn_relu_kernel(%arg0: i32, %arg1: memref<32x8xbf16, #tpu.memory_space<vmem>>, %arg2: memref<1x8xf32, #tpu.memory_space<vmem>>, %arg3: memref<1x8xf32, #tpu.memory_space<vmem>>, %arg4: memref<32x8xbf16, #tpu.memory_space<vmem>>) attributes {dimension_semantics = [#tpu.dimension_semantics<parallel>], iteration_bounds = array<i64: 4>, scalar_prefetch = 0 : i64, scratch_operands = 0 : i64, tpu.core_type = #tpu.core_type<tc>, window_params = [{transform_indices = @transform_0, window_bounds = array<i64: 32, 8>}, {pipeline_mode = #tpu.pipeline_mode<synchronous>, transform_indices = @transform_1, window_bounds = array<i64: 1, 8>}, {pipeline_mode = #tpu.pipeline_mode<synchronous>, transform_indices = @transform_2, window_bounds = array<i64: 1, 8>}, {transform_indices = @transform_3, window_bounds = array<i64: 32, 8>}]} {
    %c0 = arith.constant 0 : index
    %c0_0 = arith.constant 0 : index
    %0 = vector.load %arg1[%c0, %c0_0] : memref<32x8xbf16, #tpu.memory_space<vmem>>, vector<32x8xbf16>
    %1 = arith.extf %0 : vector<32x8xbf16> to vector<32x8xf32>
    %c0_1 = arith.constant 0 : index
    %c0_2 = arith.constant 0 : index
    %2 = vector.load %arg2[%c0_1, %c0_2] : memref<1x8xf32, #tpu.memory_space<vmem>>, vector<1x8xf32>
    %3 = vector.broadcast %2 : vector<1x8xf32> to vector<32x8xf32>
    %4 = arith.mulf %1, %3 : vector<32x8xf32>
    %c0_3 = arith.constant 0 : index
    %c0_4 = arith.constant 0 : index
    %5 = vector.load %arg3[%c0_3, %c0_4] : memref<1x8xf32, #tpu.memory_space<vmem>>, vector<1x8xf32>
    %6 = vector.broadcast %5 : vector<1x8xf32> to vector<32x8xf32>
    %7 = arith.addf %4, %6 : vector<32x8xf32>
    %cst = arith.constant 0.000000e+00 : f32
    %8 = vector.broadcast %cst : f32 to vector<32x8xf32>
    %9 = arith.maximumf %7, %8 : vector<32x8xf32>
    %10 = arith.truncf %9 : vector<32x8xf32> to vector<32x8xbf16>
    %c0_5 = arith.constant 0 : index
    %c0_6 = arith.constant 0 : index
    %11 = vector.load %arg4[%c0_5, %c0_6] : memref<32x8xbf16, #tpu.memory_space<vmem>>, vector<32x8xbf16>
    tpu.vector_store %arg4[%c0_5, %c0_6], %10 {strides = array<i32>} : memref<32x8xbf16, #tpu.memory_space<vmem>>, vector<32x8xbf16>,
    return
  }
  func.func @transform_0(%arg0: i32) -> (i32, i32) {
    %c0_i32 = arith.constant 0 : i32
    %c0_i32_0 = arith.constant 0 : i32
    return %arg0, %c0_i32 : i32, i32
  }
  func.func @transform_1(%arg0: i32) -> (i32, i32) {
    %c0_i32 = arith.constant 0 : i32
    %c0_i32_0 = arith.constant 0 : i32
    %c0_i32_1 = arith.constant 0 : i32
    return %c0_i32, %c0_i32_0 : i32, i32
  }
  func.func @transform_2(%arg0: i32) -> (i32, i32) {
    %c0_i32 = arith.constant 0 : i32
    %c0_i32_0 = arith.constant 0 : i32
    %c0_i32_1 = arith.constant 0 : i32
    return %c0_i32, %c0_i32_0 : i32, i32
  }
  func.func @transform_3(%arg0: i32) -> (i32, i32) {
    %c0_i32 = arith.constant 0 : i32
    %c0_i32_0 = arith.constant 0 : i32
    return %arg0, %c0_i32 : i32, i32
  }
}

module attributes {stable_mosaic.version = 11 : i64} {
  func.func @_conv_stats_kernel(%arg0: i32, %arg1: memref<32x72xbf16, #tpu.memory_space<vmem>>, %arg2: memref<72x8xbf16, #tpu.memory_space<vmem>>, %arg3: memref<32x8xbf16, #tpu.memory_space<vmem>>, %arg4: memref<1x8xf32, #tpu.memory_space<vmem>>, %arg5: memref<1x8xf32, #tpu.memory_space<vmem>>) attributes {dimension_semantics = [#tpu.dimension_semantics<arbitrary>], iteration_bounds = array<i64: 4>, scalar_prefetch = 0 : i64, scratch_operands = 0 : i64, tpu.core_type = #tpu.core_type<tc>, window_params = [{transform_indices = @transform_0, window_bounds = array<i64: 32, 72>}, {pipeline_mode = #tpu.pipeline_mode<synchronous>, transform_indices = @transform_1, window_bounds = array<i64: 72, 8>}, {transform_indices = @transform_2, window_bounds = array<i64: 32, 8>}, {pipeline_mode = #tpu.pipeline_mode<synchronous>, transform_indices = @transform_3, window_bounds = array<i64: 1, 8>}, {pipeline_mode = #tpu.pipeline_mode<synchronous>, transform_indices = @transform_4, window_bounds = array<i64: 1, 8>}]} {
    %c0 = arith.constant 0 : index
    %c0_0 = arith.constant 0 : index
    %0 = vector.load %arg1[%c0, %c0_0] : memref<32x72xbf16, #tpu.memory_space<vmem>>, vector<32x72xbf16>
    %c0_1 = arith.constant 0 : index
    %c0_2 = arith.constant 0 : index
    %1 = vector.load %arg2[%c0_1, %c0_2] : memref<72x8xbf16, #tpu.memory_space<vmem>>, vector<72x8xbf16>
    %cst = arith.constant dense<0.000000e+00> : vector<32x8xf32>
    %2 = tpu.matmul %0, %1, %cst {dimension_numbers = #tpu.dot_dimension_numbers<[1], [0], [0], [1], [0, 0, 1, 1], [], []>} : vector<32x72xbf16>, vector<72x8xbf16>, vector<32x8xf32> -> vector<32x8xf32>
    %c0_i32 = arith.constant 0 : i32
    %3 = arith.cmpi eq, %arg0, %c0_i32 : i32
    %4 = arith.extui %3 : i1 to i32
    %c0_i32_3 = arith.constant 0 : i32
    %5 = arith.cmpi ne, %4, %c0_i32_3 : i32
    scf.if %5 {
      %cst_16 = arith.constant 0.000000e+00 : f32
      %19 = vector.broadcast %cst_16 : f32 to vector<1x8xf32>
      %c0_17 = arith.constant 0 : index
      %c0_18 = arith.constant 0 : index
      %20 = vector.load %arg4[%c0_17, %c0_18] : memref<1x8xf32, #tpu.memory_space<vmem>>, vector<1x8xf32>
      tpu.vector_store %arg4[%c0_17, %c0_18], %19 {strides = array<i32>} : memref<1x8xf32, #tpu.memory_space<vmem>>, vector<1x8xf32>,
      %cst_19 = arith.constant 0.000000e+00 : f32
      %21 = vector.broadcast %cst_19 : f32 to vector<1x8xf32>
      %c0_20 = arith.constant 0 : index
      %c0_21 = arith.constant 0 : index
      %22 = vector.load %arg5[%c0_20, %c0_21] : memref<1x8xf32, #tpu.memory_space<vmem>>, vector<1x8xf32>
      tpu.vector_store %arg5[%c0_20, %c0_21], %21 {strides = array<i32>} : memref<1x8xf32, #tpu.memory_space<vmem>>, vector<1x8xf32>,
    } else {
    }
    %c0_4 = arith.constant 0 : index
    %c0_5 = arith.constant 0 : index
    %6 = vector.load %arg4[%c0_4, %c0_5] : memref<1x8xf32, #tpu.memory_space<vmem>>, vector<1x8xf32>
    %cst_6 = arith.constant dense<0.000000e+00> : vector<8xf32>
    %7 = vector.multi_reduction <add>, %2, %cst_6 [0] : vector<32x8xf32> to vector<8xf32>
    %8 = vector.shape_cast %7 : vector<8xf32> to vector<1x8xf32>
    %9 = arith.addf %6, %8 : vector<1x8xf32>
    %c0_7 = arith.constant 0 : index
    %c0_8 = arith.constant 0 : index
    %10 = vector.load %arg4[%c0_7, %c0_8] : memref<1x8xf32, #tpu.memory_space<vmem>>, vector<1x8xf32>
    tpu.vector_store %arg4[%c0_7, %c0_8], %9 {strides = array<i32>} : memref<1x8xf32, #tpu.memory_space<vmem>>, vector<1x8xf32>,
    %c0_9 = arith.constant 0 : index
    %c0_10 = arith.constant 0 : index
    %11 = vector.load %arg5[%c0_9, %c0_10] : memref<1x8xf32, #tpu.memory_space<vmem>>, vector<1x8xf32>
    %12 = arith.mulf %2, %2 : vector<32x8xf32>
    %cst_11 = arith.constant dense<0.000000e+00> : vector<8xf32>
    %13 = vector.multi_reduction <add>, %12, %cst_11 [0] : vector<32x8xf32> to vector<8xf32>
    %14 = vector.shape_cast %13 : vector<8xf32> to vector<1x8xf32>
    %15 = arith.addf %11, %14 : vector<1x8xf32>
    %c0_12 = arith.constant 0 : index
    %c0_13 = arith.constant 0 : index
    %16 = vector.load %arg5[%c0_12, %c0_13] : memref<1x8xf32, #tpu.memory_space<vmem>>, vector<1x8xf32>
    tpu.vector_store %arg5[%c0_12, %c0_13], %15 {strides = array<i32>} : memref<1x8xf32, #tpu.memory_space<vmem>>, vector<1x8xf32>,
    %17 = arith.truncf %2 : vector<32x8xf32> to vector<32x8xbf16>
    %c0_14 = arith.constant 0 : index
    %c0_15 = arith.constant 0 : index
    %18 = vector.load %arg3[%c0_14, %c0_15] : memref<32x8xbf16, #tpu.memory_space<vmem>>, vector<32x8xbf16>
    tpu.vector_store %arg3[%c0_14, %c0_15], %17 {strides = array<i32>} : memref<32x8xbf16, #tpu.memory_space<vmem>>, vector<32x8xbf16>,
    return
  }
  func.func @transform_0(%arg0: i32) -> (i32, i32) {
    %c0_i32 = arith.constant 0 : i32
    %c0_i32_0 = arith.constant 0 : i32
    return %arg0, %c0_i32 : i32, i32
  }
  func.func @transform_1(%arg0: i32) -> (i32, i32) {
    %c0_i32 = arith.constant 0 : i32
    %c0_i32_0 = arith.constant 0 : i32
    %c0_i32_1 = arith.constant 0 : i32
    return %c0_i32, %c0_i32_0 : i32, i32
  }
  func.func @transform_2(%arg0: i32) -> (i32, i32) {
    %c0_i32 = arith.constant 0 : i32
    %c0_i32_0 = arith.constant 0 : i32
    return %arg0, %c0_i32 : i32, i32
  }
  func.func @transform_3(%arg0: i32) -> (i32, i32) {
    %c0_i32 = arith.constant 0 : i32
    %c0_i32_0 = arith.constant 0 : i32
    %c0_i32_1 = arith.constant 0 : i32
    return %c0_i32, %c0_i32_0 : i32, i32
  }
  func.func @transform_4(%arg0: i32) -> (i32, i32) {
    %c0_i32 = arith.constant 0 : i32
    %c0_i32_0 = arith.constant 0 : i32
    %c0_i32_1 = arith.constant 0 : i32
    return %c0_i32, %c0_i32_0 : i32, i32
  }
}

module attributes {stable_mosaic.version = 11 : i64} {
  func.func @_bn_relu_kernel(%arg0: i32, %arg1: memref<32x8xbf16, #tpu.memory_space<vmem>>, %arg2: memref<1x8xf32, #tpu.memory_space<vmem>>, %arg3: memref<1x8xf32, #tpu.memory_space<vmem>>, %arg4: memref<32x8xf32, #tpu.memory_space<vmem>>) attributes {dimension_semantics = [#tpu.dimension_semantics<parallel>], iteration_bounds = array<i64: 4>, scalar_prefetch = 0 : i64, scratch_operands = 0 : i64, tpu.core_type = #tpu.core_type<tc>, window_params = [{transform_indices = @transform_0, window_bounds = array<i64: 32, 8>}, {pipeline_mode = #tpu.pipeline_mode<synchronous>, transform_indices = @transform_1, window_bounds = array<i64: 1, 8>}, {pipeline_mode = #tpu.pipeline_mode<synchronous>, transform_indices = @transform_2, window_bounds = array<i64: 1, 8>}, {transform_indices = @transform_3, window_bounds = array<i64: 32, 8>}]} {
    %c0 = arith.constant 0 : index
    %c0_0 = arith.constant 0 : index
    %0 = vector.load %arg1[%c0, %c0_0] : memref<32x8xbf16, #tpu.memory_space<vmem>>, vector<32x8xbf16>
    %1 = arith.extf %0 : vector<32x8xbf16> to vector<32x8xf32>
    %c0_1 = arith.constant 0 : index
    %c0_2 = arith.constant 0 : index
    %2 = vector.load %arg2[%c0_1, %c0_2] : memref<1x8xf32, #tpu.memory_space<vmem>>, vector<1x8xf32>
    %3 = vector.broadcast %2 : vector<1x8xf32> to vector<32x8xf32>
    %4 = arith.mulf %1, %3 : vector<32x8xf32>
    %c0_3 = arith.constant 0 : index
    %c0_4 = arith.constant 0 : index
    %5 = vector.load %arg3[%c0_3, %c0_4] : memref<1x8xf32, #tpu.memory_space<vmem>>, vector<1x8xf32>
    %6 = vector.broadcast %5 : vector<1x8xf32> to vector<32x8xf32>
    %7 = arith.addf %4, %6 : vector<32x8xf32>
    %cst = arith.constant 0.000000e+00 : f32
    %8 = vector.broadcast %cst : f32 to vector<32x8xf32>
    %9 = arith.maximumf %7, %8 : vector<32x8xf32>
    %c0_5 = arith.constant 0 : index
    %c0_6 = arith.constant 0 : index
    %10 = vector.load %arg4[%c0_5, %c0_6] : memref<32x8xf32, #tpu.memory_space<vmem>>, vector<32x8xf32>
    tpu.vector_store %arg4[%c0_5, %c0_6], %9 {strides = array<i32>} : memref<32x8xf32, #tpu.memory_space<vmem>>, vector<32x8xf32>,
    return
  }
  func.func @transform_0(%arg0: i32) -> (i32, i32) {
    %c0_i32 = arith.constant 0 : i32
    %c0_i32_0 = arith.constant 0 : i32
    return %arg0, %c0_i32 : i32, i32
  }
  func.func @transform_1(%arg0: i32) -> (i32, i32) {
    %c0_i32 = arith.constant 0 : i32
    %c0_i32_0 = arith.constant 0 : i32
    %c0_i32_1 = arith.constant 0 : i32
    return %c0_i32, %c0_i32_0 : i32, i32
  }
  func.func @transform_2(%arg0: i32) -> (i32, i32) {
    %c0_i32 = arith.constant 0 : i32
    %c0_i32_0 = arith.constant 0 : i32
    %c0_i32_1 = arith.constant 0 : i32
    return %c0_i32, %c0_i32_0 : i32, i32
  }
  func.func @transform_3(%arg0: i32) -> (i32, i32) {
    %c0_i32 = arith.constant 0 : i32
    %c0_i32_0 = arith.constant 0 : i32
    return %arg0, %c0_i32 : i32, i32
  }
}

</mosaic_0001>

<bundles_post_ra>
// kernel: down_forward.5
= control target key start
LH: loop header
LB: loop body
LE: loop exit
PB: predicated region body
PF: predicated region fallthrough
CT: control target
= control target key end

     0   :  { %s351_s12 = smov 0   ;;  %s374_s0 = inlined_call_operand.vmem [shape: bf16[128,8], index: 0, kind: input, shape index: {}]   ;;  %s375_s1 = inlined_call_operand.vmem [shape: f32[1,8], index: 1, kind: input, shape index: {}]   ;;  %s376_s2 = inlined_call_operand.vmem [shape: f32[1,8], index: 2, kind: input, shape index: {}]   ;;  %s377_s3 = inlined_call_operand.vmem [shape: bf16[128,8], index: 3, kind: output, shape index: {}]  }
   0x1 LB: > { %s285_s13 = sadd.s32 4294967295, %s329_s12   ;;  %p289_p0 = scmp.ge.s32.totalorder %s329_s12, 1  ;;  %s329_s12 = sphi %s351_s12, %s13_s12  }
   0x2   : > { %p138_p1 = scmp.lt.s32.totalorder %s329_s12, 5 }
   0x4   : > { %p139_p2 = pnand %p289_p0, %p138_p1 }
   0x5   : > { %s290_s14 = sshll.u32 (!%p139_p2), %s285_s13, 2  ;;  %v294_v2 = vld [vmem:[%s375_s1] ss:$0 sm:$0xff] (!%p139_p2)  ;;  %vm224_vm0 = vcmask (!%p139_p2), 60416  }
   0x6   : > { %142 = sbr.rel (%p139_p2) target bundleno = 29 (0x1d), region = 32  ;;  %p163_p3 = scmp.lt.s32.totalorder (!%p139_p2), %s290_s14, 15  ;;  %v295_v7 = vld [vmem:[%s376_s2] ss:$0 sm:$0xff] (!%p139_p2) }
   0xd   : > { %s379_s14 = smov (!%p163_p3, %s290_s14), 15 }
   0xe   : > { %s291_s15 = sshll.u32 %s379_s14, 2 }
   0xf   : > { %s166_s18 = scalar_lea.vmem %s374_s0, %s291_s15  ;;  %s172_s25 = scalar_lea.vmem %s377_s3, %s291_s15 }
  0x10   : > { %v307_v0 = vld [vmem:[%s166_s18] sm:$0xff]   ;;  %v314_v1 = vld [vmem:[%s166_s18 + $0x8] sm:$0xff]  }
  0x11   : > { %v308_v3 = vunpack.c.l.bf16 %v307_v0  ;;  %v309_v4 = vunpack.c.h.bf16 %v307_v0  ;;  %v312_v5 = vunpack.c.l.bf16 %v314_v1  ;;  %v313_v6 = vunpack.c.h.bf16 %v314_v1 }
  0x13   : > { %v189_v8 = vmul.f32 %v308_v3, %v294_v2  ;;  %v190_v9 = vmul.f32 %v309_v4, %v294_v2  ;;  %v191_v10 = vmul.f32 %v312_v5, %v294_v2  ;;  %v192_v11 = vmul.f32 %v313_v6, %v294_v2 }
  0x15   : > { %v200_v12 = vadd.f32 %v295_v7, %v189_v8  ;;  %v201_v13 = vadd.f32 %v295_v7, %v190_v9  ;;  %v202_v14 = vadd.f32 %v295_v7, %v191_v10  ;;  %v203_v15 = vadd.f32 %v295_v7, %v192_v11 }
  0x17   : > { %v204_v16 = vmax.f32 %v200_v12, 0.0  ;;  %v205_v17 = vmax.f32 %v201_v13, 0.0  ;;  %v206_v18 = vmax.f32 %v202_v14, 0.0  ;;  %v207_v19 = vmax.f32 %v203_v15, 0.0 }
  0x19   : > { %v302_v20 = vpack.c.bf16 %v204_v16, %v204_v16  ;;  %v303_v21 = vpack.c.bf16 %v205_v17, %v205_v17  ;;  %v304_v22 = vpack.c.bf16 %v206_v18, %v206_v18  ;;  %v305_v23 = vpack.c.bf16 %v207_v19, %v207_v19 }
  0x1b   : > { %225 = vst.msk [vmem:[%s172_s25] sm:$0xf] %vm224_vm0, %v302_v20  ;;  %226 = vst.msk [vmem:[%s172_s25 + $0x4] sm:$0xf] %vm224_vm0, %v303_v21 }
  0x1c   : > { %227 = vst.msk [vmem:[%s172_s25 + $0x8] sm:$0xf] %vm224_vm0, %v304_v22  ;;  %228 = vst.msk [vmem:[%s172_s25 + $0xc] sm:$0xf] %vm224_vm0, %v305_v23 }
  0x1d PF: > { %s13_s12 = sadd.s32 1, %s329_s12  }
  0x1e   : > { %p10_p4 = scmp.ge.s32.totalorder %s13_s12, 6  }
  0x20   :  { %12 = sbr.rel (!%p10_p4) target bundleno = 1 (0x1), region = 62 }

// kernel: down_forward.4
= control target key start
LH: loop header
LB: loop body
LE: loop exit
PB: predicated region body
PF: predicated region fallthrough
CT: control target
= control target key end

     0   :  { %s516_s15 = smov 0   ;;  %s578_s0 = inlined_call_operand.vmem [shape: bf16[128,36], index: 0, kind: input, shape index: {}]   ;;  %s579_s1 = inlined_call_operand.vmem [shape: bf16[36,8], index: 1, kind: input, shape index: {}]   ;;  %s580_s2 = inlined_call_operand.vmem [shape: bf16[128,8], index: 2, kind: output, shape index: {0}]   ;;  %s581_s3 = inlined_call_operand.vmem [shape: f32[1,8], index: 3, kind: output, shape index: {1}]   ;;  %s582_s4 = inlined_call_operand.vmem [shape: f32[1,8], index: 4, kind: output, shape index: {2}]  }
   0x1 LB: > { %s425_s16 = sadd.s32 4294967295, %s488_s15   ;;  %p429_p0 = scmp.ge.s32.totalorder %s488_s15, 1  ;;  %s488_s15 = sphi %s516_s15, %s15_s15  }
   0x2   : > { %p158_p1 = scmp.lt.s32.totalorder %s488_s15, 5 }
   0x4   : > { %p159_p2 = pnand %p429_p0, %p158_p1 }
   0x5   : > { %v477_v0 = vld [vmem:[%s579_s1] sm:$0xff] (!%p159_p2)   ;;  %v478_v1 = vld [vmem:[%s579_s1 + $0x8] sm:$0xff] (!%p159_p2)   ;;  %s430_s21 = sshll.u32 (!%p159_p2), %s425_s16, 2  ;;  %v479_v2 = vld [vmem:[%s579_s1 + $0x10] ss:$0 sps:$4 sm:$0x33] (!%p159_p2)  }
   0x6   : > { %162 = sbr.rel (%p159_p2) target bundleno = 257 (0x101), region = 28  ;;  %457 = vmatprep.subr.bf16.mxu0 (!%p159_p2), %v477_v0  ;;  %p185_p3 = scmp.lt.s32.totalorder (!%p159_p2), %s430_s21, 15  ;;  %vm238_vm0 = vcmask (!%p159_p2), 1041408   ;;  %vm231_vm1 = vcmask (!%p159_p2), 293888  }
   0x7   : > { %458 = vmatpush3.bf16.msra.mxu0 (!%p159_p2), %v477_v0  ;;  %v240_v3 = vsel (!%p159_p2), %vm238_vm0, %v479_v2, 0  ;;  %p441_p4 = scmp.ne.s32.totalorder (!%p159_p2), %s425_s16, 0 }
   0x8   : > { %459 = vmatprep.subr.bf16.mxu0 (!%p159_p2), %v478_v1 }
   0xb   : > { %460 = vmatpush3.bf16.msra.mxu0 (!%p159_p2), %v478_v1 }
   0xc   : > { %467 = vmatprep.subr.msk.bf16.mxu0 (!%p159_p2), %vm238_vm0, %v479_v2 }
   0xd   : > { %s584_s21 = smov (!%p185_p3, %s430_s21), 15  ;;  %vm295_vm2 = vcmask (!%p441_p4), 57344   ;;  %v490_v10 = vmov (!%p441_p4), 0.0  }
   0xe   : > { %s431_s24 = sshll.u32 %s584_s21, 2  ;;  %296 = vst.msk [vmem:[%s581_s3] sm:$0x1] (!%p441_p4), %vm295_vm2, %v490_v10  ;;  %297 = vst.msk [vmem:[%s582_s4] sm:$0x1] (!%p441_p4), %vm295_vm2, %v490_v10 }
   0xf   : > { %s188_s27 = scalar_lea.vmem %s578_s0, %s431_s24  ;;  %s541_s30 = scalar_lea.vmem %s580_s2, %s431_s24  ;;  %462 = vmatpush3.bf16.msra.mxu0 %v240_v3 }
  0x10   : > { %v480_v4 = vld [vmem:[%s188_s27] sm:$0xff]   ;;  %v481_v5 = vld [vmem:[%s188_s27 + $0x8] sm:$0xff]  }
  0x11   : > { %463 = vmatprep.mubr.msk.bf16.mxu0 %vm231_vm1, %v480_v4 }
  0x12   : > { %464 = vmatmul.mubr.msk.bf16.vlgmr.msra.gmra.mrb[0].mxu0 %vm231_vm1, %v481_v5 }
  0xe2   : > { %294 = sbr.rel (%p441_p4) target bundleno = 233 (0xe9), region = 32 }
  0xe5   : > { %v465_v6 = vpop.f32.mrb[0].mxu0 }
  0xe6   : > { %v276_v7 = vpop.f32.mrb[1].mxu0 }
  0xe7   : > { %v466_v8 = vpop.f32.mrb[2].mxu0 }
  0xe8   : > { %v279_v9 = vpop.f32.mrb[3].mxu0 }
  0xe9 PF: > { %vm299_vm3 = vcmask 64512   ;;  %v317_v11 = vmul.f32 %v276_v7, %v276_v7  ;;  %v318_v12 = vmul.f32 %v279_v9, %v279_v9  ;;  %v319_v18 = vmul.f32 %v465_v6, %v465_v6  ;;  %v298_v42 = vld [vmem:[%s581_s3] sm:$0x1] }
  0xea   : > { %v300_v13 = vsel %vm299_vm3, %v276_v7, 0.0  ;;  %v301_v14 = vsel %vm299_vm3, %v279_v9, 0.0  ;;  %v303_v15 = vsel %vm299_vm3, %v465_v6, 0.0  ;;  %v305_v16 = vsel %vm299_vm3, %v466_v8, 0.0  ;;  %v316_v45 = vld [vmem:[%s582_s4] sm:$0x1] }
  0xeb   : > { %v302_v17 = vadd.f32 %v301_v14, %v300_v13  ;;  %v320_v19 = vmul.f32 %v466_v8, %v466_v8  ;;  %v321_v20 = vsel %vm299_vm3, %v317_v11, 0.0  ;;  %v322_v21 = vsel %vm299_vm3, %v318_v12, 0.0 }
  0xec   : > { %v448_v22 = vpack.c.bf16 %v276_v7, %v276_v7  ;;  %vm352_vm4 = vcmask 60416   ;;  %v449_v23 = vpack.c.bf16 %v279_v9, %v279_v9  ;;  %v323_v25 = vadd.f32 %v322_v21, %v321_v20 }
  0xed   : > { %v304_v24 = vadd.f32 %v303_v15, %v302_v17  ;;  %v324_v26 = vsel %vm299_vm3, %v319_v18, 0.0  ;;  %v326_v27 = vsel %vm299_vm3, %v320_v19, 0.0  ;;  %v450_v28 = vpack.c.bf16 %v465_v6, %v465_v6 }
  0xee   : > { %353 = vst.msk [vmem:[%s541_s30] sm:$0xf] %vm352_vm4, %v448_v22  ;;  %354 = vst.msk [vmem:[%s541_s30 + $0x4] sm:$0xf] %vm352_vm4, %v449_v23  ;;  %v451_v29 = vpack.c.bf16 %v466_v8, %v466_v8  ;;  %v325_v31 = vadd.f32 %v324_v26, %v323_v25  ;;  %vm314_vm5 = vcmask 57344  }
  0xef   : > { %v306_v30 = vadd.f32 %v305_v16, %v304_v24  ;;  %355 = vst.msk [vmem:[%s541_s30 + $0x8] sm:$0xf] %vm352_vm4, %v450_v28 }
  0xf0   : > { %356 = vst.msk [vmem:[%s541_s30 + $0xc] sm:$0xf] %vm352_vm4, %v451_v29  ;;  %v327_v33 = vadd.f32 %v326_v27, %v325_v31 }
  0xf1   : > { %v307_v32 = vrot.slane %v306_v30, 4 }
  0xf2   : > { %v328_v35 = vrot.slane %v327_v33, 4 }
  0xf3   : > { %v308_v34 = vadd.f32 %v307_v32, %v306_v30 }
  0xf4   : > { %v329_v37 = vadd.f32 %v328_v35, %v327_v33 }
  0xf5   : > { %v309_v36 = vrot.slane %v308_v34, 2 }
  0xf6   : > { %v330_v39 = vrot.slane %v329_v37, 2 }
  0xf7   : > { %v310_v38 = vadd.f32 %v309_v36, %v308_v34 }
  0xf8   : > { %v331_v41 = vadd.f32 %v330_v39, %v329_v37 }
  0xf9   : > { %v311_v40 = vrot.slane %v310_v38, 1 }
  0xfa   : > { %v332_v44 = vrot.slane %v331_v41, 1 }
  0xfb   : > { %v312_v43 = vadd.f32 %v311_v40, %v310_v38 }
  0xfc   : > { %v333_v47 = vadd.f32 %v332_v44, %v331_v41 }
  0xfd   : > { %v313_v46 = vadd.f32 %v312_v43, %v298_v42 }
  0xfe   : > { %v334_v48 = vadd.f32 %v333_v47, %v316_v45 }
  0xff   : > { %315 = vst.msk [vmem:[%s581_s3] sm:$0x1] %vm314_vm5, %v313_v46 }
 0x100   : > { %335 = vst.msk [vmem:[%s582_s4] sm:$0x1] %vm314_vm5, %v334_v48 }
 0x101 PF: > { %s15_s15 = sadd.s32 1, %s488_s15  }
 0x102   : > { %p12_p5 = scmp.ge.s32.totalorder %s15_s15, 6  }
 0x104   :  { %14 = sbr.rel (!%p12_p5) target bundleno = 1 (0x1), region = 78 }

// kernel: down_forward.6
= control target key start
LH: loop header
LB: loop body
LE: loop exit
PB: predicated region body
PF: predicated region fallthrough
CT: control target
= control target key end

     0   :  { %s542_s15 = smov 0   ;;  %s610_s0 = inlined_call_operand.vmem [shape: bf16[128,72], index: 0, kind: input, shape index: {}]   ;;  %s611_s1 = inlined_call_operand.vmem [shape: bf16[72,8], index: 1, kind: input, shape index: {}]   ;;  %s612_s2 = inlined_call_operand.vmem [shape: bf16[128,8], index: 2, kind: output, shape index: {0}]   ;;  %s613_s3 = inlined_call_operand.vmem [shape: f32[1,8], index: 3, kind: output, shape index: {1}]   ;;  %s614_s4 = inlined_call_operand.vmem [shape: f32[1,8], index: 4, kind: output, shape index: {2}]  }
   0x1 LB: > { %s441_s16 = sadd.s32 4294967295, %s514_s15   ;;  %p445_p0 = scmp.ge.s32.totalorder %s514_s15, 1  ;;  %s514_s15 = sphi %s542_s15, %s15_s15  }
   0x2   : > { %p158_p1 = scmp.lt.s32.totalorder %s514_s15, 5 }
   0x4   : > { %p159_p2 = pnand %p445_p0, %p158_p1 }
   0x5   : > { %v501_v0 = vld [vmem:[%s611_s1] sm:$0xff] (!%p159_p2)   ;;  %v502_v1 = vld [vmem:[%s611_s1 + $0x8] sm:$0xff] (!%p159_p2)   ;;  %s446_s21 = sshll.u32 (!%p159_p2), %s441_s16, 2  ;;  %v503_v2 = vld [vmem:[%s611_s1 + $0x10] sm:$0xff] (!%p159_p2)   ;;  %vm247_vm0 = vcmask (!%p159_p2), 588800   ;;  %vm254_vm1 = vcmask (!%p159_p2), 1043456  }
   0x6   : > { %162 = sbr.rel (%p159_p2) target bundleno = 265 (0x109), region = 28  ;;  %477 = vmatprep.subr.bf16.mxu0 (!%p159_p2), %v501_v0  ;;  %p185_p3 = scmp.lt.s32.totalorder (!%p159_p2), %s446_s21, 15  ;;  %v504_v3 = vld [vmem:[%s611_s1 + $0x18] sm:$0xff] (!%p159_p2)   ;;  %v505_v5 = vld [vmem:[%s611_s1 + $0x20] ss:$0 sps:$4 sm:$0xff] (!%p159_p2)  }
   0x7   : > { %478 = vmatpush3.bf16.msra.mxu0 (!%p159_p2), %v501_v0  ;;  %v256_v6 = vsel (!%p159_p2), %vm254_vm1, %v505_v5, 0  ;;  %p459_p4 = scmp.ne.s32.totalorder (!%p159_p2), %s441_s16, 0 }
   0x8   : > { %479 = vmatprep.subr.bf16.mxu0 (!%p159_p2), %v502_v1 }
   0xb   : > { %480 = vmatpush3.bf16.msra.mxu0 (!%p159_p2), %v502_v1 }
   0xc   : > { %481 = vmatprep.subr.bf16.mxu0 (!%p159_p2), %v503_v2 }
   0xd   : > { %s616_s21 = smov (!%p185_p3, %s446_s21), 15  ;;  %vm311_vm2 = vcmask (!%p459_p4), 57344   ;;  %v516_v12 = vmov (!%p459_p4), 0.0  }
   0xe   : > { %s447_s24 = sshll.u32 %s616_s21, 2  ;;  %312 = vst.msk [vmem:[%s613_s3] sm:$0x1] (!%p459_p4), %vm311_vm2, %v516_v12  ;;  %313 = vst.msk [vmem:[%s614_s4] sm:$0x1] (!%p459_p4), %vm311_vm2, %v516_v12 }
   0xf   : > { %s188_s29 = scalar_lea.vmem %s610_s0, %s447_s24  ;;  %s570_s6 = scalar_lea.vmem %s612_s2, %s447_s24  ;;  %482 = vmatpush3.bf16.msra.mxu0 %v503_v2 }
  0x10   : > { %v506_v4 = vld [vmem:[%s188_s29] sm:$0xff]   ;;  %483 = vmatprep.subr.bf16.mxu0 %v504_v3  ;;  %v507_v7 = vld [vmem:[%s188_s29 + $0x8] sm:$0xff]  }
  0x11   : > { %487 = vmatprep.mubr.msk.bf16.mxu0 %vm247_vm0, %v506_v4 }
  0x13   : > { %484 = vmatpush3.bf16.msra.mxu0 %v504_v3 }
  0x14   : > { %491 = vmatprep.subr.msk.bf16.mxu0 %vm254_vm1, %v505_v5 }
  0x17   : > { %486 = vmatpush3.bf16.msra.mxu0 %v256_v6 }
  0x1a   : > { %488 = vmatmul.mubr.msk.bf16.vlgmr.msra.gmra.mrb[0].mxu0 %vm247_vm0, %v507_v7 }
  0xea   : > { %310 = sbr.rel (%p459_p4) target bundleno = 241 (0xf1), region = 32 }
  0xed   : > { %v489_v8 = vpop.f32.mrb[0].mxu0 }
  0xee   : > { %v292_v9 = vpop.f32.mrb[1].mxu0 }
  0xef   : > { %v490_v10 = vpop.f32.mrb[2].mxu0 }
  0xf0   : > { %v295_v11 = vpop.f32.mrb[3].mxu0 }
  0xf1 PF: > { %vm315_vm3 = vcmask 64512   ;;  %v333_v13 = vmul.f32 %v292_v9, %v292_v9  ;;  %v334_v14 = vmul.f32 %v295_v11, %v295_v11  ;;  %v335_v20 = vmul.f32 %v489_v8, %v489_v8  ;;  %v314_v44 = vld [vmem:[%s613_s3] sm:$0x1] }
  0xf2   : > { %v316_v15 = vsel %vm315_vm3, %v292_v9, 0.0  ;;  %v317_v16 = vsel %vm315_vm3, %v295_v11, 0.0  ;;  %v319_v17 = vsel %vm315_vm3, %v489_v8, 0.0  ;;  %v321_v18 = vsel %vm315_vm3, %v490_v10, 0.0  ;;  %v332_v47 = vld [vmem:[%s614_s4] sm:$0x1] }
  0xf3   : > { %v318_v19 = vadd.f32 %v317_v16, %v316_v15  ;;  %v336_v21 = vmul.f32 %v490_v10, %v490_v10  ;;  %v337_v22 = vsel %vm315_vm3, %v333_v13, 0.0  ;;  %v338_v23 = vsel %vm315_vm3, %v334_v14, 0.0 }
  0xf4   : > { %v466_v24 = vpack.c.bf16 %v292_v9, %v292_v9  ;;  %vm368_vm4 = vcmask 60416   ;;  %v467_v25 = vpack.c.bf16 %v295_v11, %v295_v11  ;;  %v339_v27 = vadd.f32 %v338_v23, %v337_v22 }
  0xf5   : > { %v320_v26 = vadd.f32 %v319_v17, %v318_v19  ;;  %v340_v28 = vsel %vm315_vm3, %v335_v20, 0.0  ;;  %v342_v29 = vsel %vm315_vm3, %v336_v21, 0.0  ;;  %v468_v30 = vpack.c.bf16 %v489_v8, %v489_v8 }
  0xf6   : > { %369 = vst.msk [vmem:[%s570_s6] sm:$0xf] %vm368_vm4, %v466_v24  ;;  %370 = vst.msk [vmem:[%s570_s6 + $0x4] sm:$0xf] %vm368_vm4, %v467_v25  ;;  %v469_v31 = vpack.c.bf16 %v490_v10, %v490_v10  ;;  %v341_v33 = vadd.f32 %v340_v28, %v339_v27  ;;  %vm330_vm5 = vcmask 57344  }
  0xf7   : > { %v322_v32 = vadd.f32 %v321_v18, %v320_v26  ;;  %371 = vst.msk [vmem:[%s570_s6 + $0x8] sm:$0xf] %vm368_vm4, %v468_v30 }
  0xf8   : > { %372 = vst.msk [vmem:[%s570_s6 + $0xc] sm:$0xf] %vm368_vm4, %v469_v31  ;;  %v343_v35 = vadd.f32 %v342_v29, %v341_v33 }
  0xf9   : > { %v323_v34 = vrot.slane %v322_v32, 4 }
  0xfa   : > { %v344_v37 = vrot.slane %v343_v35, 4 }
  0xfb   : > { %v324_v36 = vadd.f32 %v323_v34, %v322_v32 }
  0xfc   : > { %v345_v39 = vadd.f32 %v344_v37, %v343_v35 }
  0xfd   : > { %v325_v38 = vrot.slane %v324_v36, 2 }
  0xfe   : > { %v346_v41 = vrot.slane %v345_v39, 2 }
  0xff   : > { %v326_v40 = vadd.f32 %v325_v38, %v324_v36 }
 0x100   : > { %v347_v43 = vadd.f32 %v346_v41, %v345_v39 }
 0x101   : > { %v327_v42 = vrot.slane %v326_v40, 1 }
 0x102   : > { %v348_v46 = vrot.slane %v347_v43, 1 }
 0x103   : > { %v328_v45 = vadd.f32 %v327_v42, %v326_v40 }
 0x104   : > { %v349_v49 = vadd.f32 %v348_v46, %v347_v43 }
 0x105   : > { %v329_v48 = vadd.f32 %v328_v45, %v314_v44 }
 0x106   : > { %v350_v50 = vadd.f32 %v349_v49, %v332_v47 }
 0x107   : > { %331 = vst.msk [vmem:[%s613_s3] sm:$0x1] %vm330_vm5, %v329_v48 }
 0x108   : > { %351 = vst.msk [vmem:[%s614_s4] sm:$0x1] %vm330_vm5, %v350_v50 }
 0x109 PF: > { %s15_s15 = sadd.s32 1, %s514_s15  }
 0x10a   : > { %p12_p5 = scmp.ge.s32.totalorder %s15_s15, 6  }
 0x10c   :  { %14 = sbr.rel (!%p12_p5) target bundleno = 1 (0x1), region = 78 }

// kernel: down_forward.7
= control target key start
LH: loop header
LB: loop body
LE: loop exit
PB: predicated region body
PF: predicated region fallthrough
CT: control target
= control target key end

     0   :  { %s327_s12 = smov 0   ;;  %s350_s0 = inlined_call_operand.vmem [shape: bf16[128,8], index: 0, kind: input, shape index: {}]   ;;  %s351_s1 = inlined_call_operand.vmem [shape: f32[1,8], index: 1, kind: input, shape index: {}]   ;;  %s352_s2 = inlined_call_operand.vmem [shape: f32[1,8], index: 2, kind: input, shape index: {}]   ;;  %s353_s3 = inlined_call_operand.vmem [shape: f32[128,8], index: 3, kind: output, shape index: {}]  }
   0x1 LB: > { %s269_s13 = sadd.s32 4294967295, %s305_s12   ;;  %p273_p0 = scmp.ge.s32.totalorder %s305_s12, 1  ;;  %s305_s12 = sphi %s327_s12, %s13_s12  }
   0x2   : > { %p138_p1 = scmp.lt.s32.totalorder %s305_s12, 5 }
   0x4   : > { %p139_p2 = pnand %p273_p0, %p138_p1 }
   0x5   : > { %s274_s14 = sshll.u32 (!%p139_p2), %s269_s13, 2  ;;  %v278_v2 = vld [vmem:[%s351_s1] ss:$0 sm:$0xff] (!%p139_p2)  ;;  %vm208_vm0 = vcmask (!%p139_p2), 64512  }
   0x6   : > { %142 = sbr.rel (%p139_p2) target bundleno = 27 (0x1b), region = 32  ;;  %p163_p3 = scmp.lt.s32.totalorder (!%p139_p2), %s274_s14, 15  ;;  %v279_v7 = vld [vmem:[%s352_s2] ss:$0 sm:$0xff] (!%p139_p2) }
   0xd   : > { %s355_s14 = smov (!%p163_p3, %s274_s14), 15 }
   0xe   : > { %s275_s15 = sshll.u32 %s355_s14, 2  ;;  %s277_s23 = sshll.u32 %s355_s14, 3 }
   0xf   : > { %s166_s18 = scalar_lea.vmem %s350_s0, %s275_s15  ;;  %s172_s26 = scalar_lea.vmem %s353_s3, %s277_s23 }
  0x10   : > { %v283_v0 = vld [vmem:[%s166_s18] sm:$0xff]   ;;  %v290_v1 = vld [vmem:[%s166_s18 + $0x8] sm:$0xff]  }
  0x11   : > { %v284_v3 = vunpack.c.l.bf16 %v283_v0  ;;  %v285_v4 = vunpack.c.h.bf16 %v283_v0  ;;  %v288_v5 = vunpack.c.l.bf16 %v290_v1  ;;  %v289_v6 = vunpack.c.h.bf16 %v290_v1 }
  0x13   : > { %v189_v8 = vmul.f32 %v284_v3, %v278_v2  ;;  %v190_v9 = vmul.f32 %v285_v4, %v278_v2  ;;  %v191_v10 = vmul.f32 %v288_v5, %v278_v2  ;;  %v192_v11 = vmul.f32 %v289_v6, %v278_v2 }
  0x15   : > { %v200_v12 = vadd.f32 %v279_v7, %v189_v8  ;;  %v201_v13 = vadd.f32 %v279_v7, %v190_v9  ;;  %v202_v14 = vadd.f32 %v279_v7, %v191_v10  ;;  %v203_v15 = vadd.f32 %v279_v7, %v192_v11 }
  0x17   : > { %v204_v16 = vmax.f32 %v200_v12, 0.0  ;;  %v205_v17 = vmax.f32 %v201_v13, 0.0  ;;  %v206_v18 = vmax.f32 %v202_v14, 0.0  ;;  %v207_v19 = vmax.f32 %v203_v15, 0.0 }
  0x19   : > { %209 = vst.msk [vmem:[%s172_s26] sm:$0xff] %vm208_vm0, %v204_v16  ;;  %210 = vst.msk [vmem:[%s172_s26 + $0x8] sm:$0xff] %vm208_vm0, %v205_v17 }
  0x1a   : > { %211 = vst.msk [vmem:[%s172_s26 + $0x10] sm:$0xff] %vm208_vm0, %v206_v18  ;;  %212 = vst.msk [vmem:[%s172_s26 + $0x18] sm:$0xff] %vm208_vm0, %v207_v19 }
  0x1b PF: > { %s13_s12 = sadd.s32 1, %s305_s12  }
  0x1c   : > { %p10_p4 = scmp.ge.s32.totalorder %s13_s12, 6  }
  0x1e   :  { %12 = sbr.rel (!%p10_p4) target bundleno = 1 (0x1), region = 62 }

</bundles_post_ra>
